<compile_context>
chip_gen: v7x
topology: tpu7x:2x2x1
jax: 0.10.0
libtpu: 0.0.40
codegen_flags: <defaults>
</compile_context>

<pallas_src>
import functools

import jax
import jax.numpy as jnp
from jax.experimental import pallas as pl
from jax.experimental.pallas import tpu as pltpu


def _round_up(x, m):
    return (x + m - 1) // m * m


def _gelu_exact(x):
    # ACT2FN["gelu"] (exact, erf-based) — matches torch.nn.GELU default.
    return 0.5 * x * (1.0 + jax.lax.erf(x * (1.0 / jnp.sqrt(2.0))))


def _mlp_kernel(x_ref, wug_ref, bug_ref, wd_ref, bd_ref, o_ref, acc_ref, *, tk):
    k = pl.program_id(1)

    @pl.when(k == 0)
    def _init():
        acc_ref[...] = jnp.zeros_like(acc_ref)

    x = x_ref[...]                                             # (tm, D)
    # Fused up|gate projection for this hidden chunk: one MXU push.
    ug = jnp.dot(x, wug_ref[...],
                 preferred_element_type=jnp.float32) + bug_ref[...]   # (tm, 2tk)
    up = ug[:, :tk]                                            # lane-aligned slice
    gate = ug[:, tk:]
    h = up * _gelu_exact(gate)                                 # (tm, tk) f32

    # Accumulate the down projection for this hidden chunk.
    acc_ref[...] += jnp.dot(h.astype(wd_ref.dtype), wd_ref[...],
                            preferred_element_type=jnp.float32)

    @pl.when(k == pl.num_programs(1) - 1)
    def _finalize():
        o_ref[...] = (acc_ref[...] + bd_ref[...]).astype(o_ref.dtype)


def neural_mlp(latents, params, *, tm=256, tk=256):
    """Fused gated-MLP forward. latents: [..., size_in] -> [..., size_out]."""
    wu, bu, wg, bg, wd, bd = params
    D = latents.shape[-1]
    hidden = wu.shape[1]            # 4 * size_in
    size_out = wd.shape[1]
    dtype = latents.dtype

    x2 = latents.reshape(-1, D)
    M = x2.shape[0]

    # ---- tile selection (clamped / aligned for tiny demo shapes) ----
    row_align = 8 if jnp.dtype(dtype).itemsize >= 4 else 16
    tm = _round_up(max(min(tm, _round_up(M, row_align)), row_align), row_align)
    tk = _round_up(max(min(tk, _round_up(hidden, 128)), 128), 128)
    Mp = _round_up(M, tm)
    Hp = _round_up(hidden, tk)
    No = _round_up(size_out, 128)      # lane-dense output
    Kt = Hp // tk
    It = Mp // tm

    # ---- pad / repack operands (would be done offline once in a real model) ----
    if Mp != M:
        x2 = jnp.pad(x2, ((0, Mp - M), (0, 0)))

    wu_p = jnp.pad(wu, ((0, 0), (0, Hp - hidden)))
    wg_p = jnp.pad(wg, ((0, 0), (0, Hp - hidden)))
    bu_p = jnp.pad(bu, ((0, 0), (0, Hp - hidden)))
    bg_p = jnp.pad(bg, ((0, 0), (0, Hp - hidden)))
    # Per-hidden-chunk fused [up | gate] weight: (Kt, D, 2*tk)
    wug = jnp.concatenate(
        [wu_p.reshape(D, Kt, tk).transpose(1, 0, 2),
         wg_p.reshape(D, Kt, tk).transpose(1, 0, 2)], axis=2)
    bug = jnp.concatenate(
        [bu_p.reshape(1, Kt, tk).transpose(1, 0, 2),
         bg_p.reshape(1, Kt, tk).transpose(1, 0, 2)], axis=2)          # (Kt, 1, 2tk)
    wd_p = jnp.pad(wd, ((0, Hp - hidden), (0, No - size_out))
                   ).reshape(Kt, tk, No)                               # (Kt, tk, No)
    bd_p = jnp.pad(bd, ((0, 0), (0, No - size_out)))                   # (1, No)

    # ---- VMEM budget (double-buffered inputs/output + f32 accumulator) ----
    itm = jnp.dtype(dtype).itemsize
    est = (2 * tm * D * itm                 # x
           + 2 * D * 2 * tk * itm           # fused up|gate weight chunk
           + 2 * 8 * 2 * tk * itm           # up|gate bias chunk (sublane-padded)
           + 2 * tk * No * itm              # down weight chunk
           + 2 * 8 * No * itm               # down bias
           + 2 * tm * No * itm              # output tile
           + tm * No * 4                    # accumulator scratch
           + 2 * tm * 2 * tk * 4)           # f32 intermediates headroom
    vmem_limit = min(max(32 * 1024 * 1024, int(est * 1.5)), 100 * 1024 * 1024)

    flops = 2 * Mp * D * (2 * Hp) + 2 * Mp * Hp * No
    transcendentals = Mp * Hp
    bytes_accessed = (x2.size * itm + wug.size * itm + bug.size * itm
                      + wd_p.size * itm + bd_p.size * itm + Mp * No * itm)

    grid = (It, Kt)
    out2 = pl.pallas_call(
        functools.partial(_mlp_kernel, tk=tk),
        out_shape=jax.ShapeDtypeStruct((Mp, No), dtype),
        grid_spec=pltpu.PrefetchScalarGridSpec(
            num_scalar_prefetch=0,
            grid=grid,
            in_specs=[
                pl.BlockSpec((tm, D), lambda i, k: (i, 0)),            # x rows
                pl.BlockSpec((None, D, 2 * tk), lambda i, k: (k, 0, 0)),  # W_up|W_gate chunk
                pl.BlockSpec((None, 1, 2 * tk), lambda i, k: (k, 0, 0)),  # b_up|b_gate chunk
                pl.BlockSpec((None, tk, No), lambda i, k: (k, 0, 0)),     # W_down chunk
                pl.BlockSpec((1, No), lambda i, k: (0, 0)),               # b_down
            ],
            out_specs=pl.BlockSpec((tm, No), lambda i, k: (i, 0)),
            scratch_shapes=[pltpu.VMEM((tm, No), jnp.float32)],        # down-proj accumulator
        ),
        compiler_params=pltpu.CompilerParams(
            dimension_semantics=("parallel", "arbitrary"),
            vmem_limit_bytes=vmem_limit,
        ),
        cost_estimate=pl.CostEstimate(
            flops=flops,
            transcendentals=transcendentals,
            bytes_accessed=bytes_accessed,
        ),
    )(x2, wug, bug, wd_p, bd_p)

    out2 = out2[:M, :size_out]
    return out2.reshape(*latents.shape[:-1], size_out)


def init_params(key, size_in, size_out, dtype=jnp.float32):
    """Deterministic param init matching NeuralMLP(size_in, size_out, use_bias=True)."""
    hidden = 4 * size_in
    ks = jax.random.split(key, 6)
    scale_in = 1.0 / jnp.sqrt(size_in)
    scale_h = 1.0 / jnp.sqrt(hidden)
    # stored already transposed to (in, out)
    wu = jax.random.uniform(ks[0], (size_in, hidden), dtype, -scale_in, scale_in)
    bu = jax.random.uniform(ks[1], (1, hidden), dtype, -scale_in, scale_in)
    wg = jax.random.uniform(ks[2], (size_in, hidden), dtype, -scale_in, scale_in)
    bg = jax.random.uniform(ks[3], (1, hidden), dtype, -scale_in, scale_in)
    wd = jax.random.uniform(ks[4], (hidden, size_out), dtype, -scale_h, scale_h)
    bd = jax.random.uniform(ks[5], (1, size_out), dtype, -scale_h, scale_h)
    return (wu, bu, wg, bg, wd, bd)


def _reference(latents, params):
    wu, bu, wg, bg, wd, bd = params
    up = latents @ wu + bu[0]
    gate = latents @ wg + bg[0]
    h = up * _gelu_exact(gate)
    return h @ wd + bd[0]


if __name__ == "__main__":
    batch, seq, size_in, size_out = 2, 8, 32, 32

    key = jax.random.PRNGKey(0)
    k_x, k_p = jax.random.split(key)
    x = jax.random.normal(k_x, (batch, seq, size_in), jnp.float32)
    params = init_params(k_p, size_in, size_out)

    out = neural_mlp(x, params)
    out = jax.block_until_ready(out)

    ref = _reference(x, params)
    assert out.shape == (batch, seq, size_out)
    assert jnp.allclose(out, ref, atol=1e-4, rtol=1e-4), "mismatch vs reference"

    print("KERNEL_OK")
</pallas_src>

<mosaic_0001>
module attributes {stable_mosaic.version = 11 : i64} {
  func.func @_mlp_kernel(%arg0: i32, %arg1: i32, %arg2: memref<16x32xf32, #tpu.memory_space<vmem>>, %arg3: memref<1x32x256xf32, #tpu.memory_space<vmem>>, %arg4: memref<1x1x256xf32, #tpu.memory_space<vmem>>, %arg5: memref<1x128x128xf32, #tpu.memory_space<vmem>>, %arg6: memref<1x128xf32, #tpu.memory_space<vmem>>, %arg7: memref<16x128xf32, #tpu.memory_space<vmem>>, %arg8: memref<16x128xf32, #tpu.memory_space<vmem>>) attributes {dimension_semantics = [#tpu.dimension_semantics<parallel>, #tpu.dimension_semantics<arbitrary>], iteration_bounds = array<i64: 1, 1>, scalar_prefetch = 0 : i64, scratch_operands = 1 : i64, tpu.core_type = #tpu.core_type<tc>, window_params = [{transform_indices = @transform_0, window_bounds = array<i64: 16, 32>}, {transform_indices = @transform_1, window_bounds = array<i64: 1, 32, 256>}, {transform_indices = @transform_2, window_bounds = array<i64: 1, 1, 256>}, {transform_indices = @transform_3, window_bounds = array<i64: 1, 128, 128>}, {pipeline_mode = #tpu.pipeline_mode<synchronous>, transform_indices = @transform_4, window_bounds = array<i64: 1, 128>}, {transform_indices = @transform_5, window_bounds = array<i64: 16, 128>}]} {
    %c0_i32 = arith.constant 0 : i32
    %0 = arith.cmpi eq, %arg1, %c0_i32 : i32
    %1 = arith.extui %0 : i1 to i32
    %c0_i32_0 = arith.constant 0 : i32
    %2 = arith.cmpi ne, %1, %c0_i32_0 : i32
    scf.if %2 {
      %cst_22 = arith.constant 0.000000e+00 : f32
      %33 = vector.broadcast %cst_22 : f32 to vector<16x128xf32>
      %c0_23 = arith.constant 0 : index
      %c0_24 = arith.constant 0 : index
      %34 = vector.load %arg8[%c0_23, %c0_24] : memref<16x128xf32, #tpu.memory_space<vmem>>, vector<16x128xf32>
      tpu.vector_store %arg8[%c0_23, %c0_24], %33 {strides = array<i32>} : memref<16x128xf32, #tpu.memory_space<vmem>>, vector<16x128xf32>,
    } else {
    }
    %c0 = arith.constant 0 : index
    %c0_1 = arith.constant 0 : index
    %3 = vector.load %arg2[%c0, %c0_1] : memref<16x32xf32, #tpu.memory_space<vmem>>, vector<16x32xf32>
    %c0_2 = arith.constant 0 : index
    %c0_3 = arith.constant 0 : index
    %c0_4 = arith.constant 0 : index
    %4 = vector.load %arg3[%c0_2, %c0_3, %c0_4] : memref<1x32x256xf32, #tpu.memory_space<vmem>>, vector<1x32x256xf32>
    %5 = vector.shape_cast %4 : vector<1x32x256xf32> to vector<32x256xf32>
    %cst = arith.constant dense<0.000000e+00> : vector<16x256xf32>
    %6 = tpu.matmul %3, %5, %cst {dimension_numbers = #tpu.dot_dimension_numbers<[1], [0], [0], [1], [0, 0, 1, 1], [], []>} : vector<16x32xf32>, vector<32x256xf32>, vector<16x256xf32> -> vector<16x256xf32>
    %c0_5 = arith.constant 0 : index
    %c0_6 = arith.constant 0 : index
    %c0_7 = arith.constant 0 : index
    %7 = vector.load %arg4[%c0_5, %c0_6, %c0_7] : memref<1x1x256xf32, #tpu.memory_space<vmem>>, vector<1x1x256xf32>
    %8 = vector.shape_cast %7 : vector<1x1x256xf32> to vector<1x256xf32>
    %9 = vector.broadcast %8 : vector<1x256xf32> to vector<16x256xf32>
    %10 = arith.addf %6, %9 : vector<16x256xf32>
    %11 = vector.extract_strided_slice %10 {offsets = [0, 0], sizes = [16, 128], strides = [1, 1]} : vector<16x256xf32> to vector<16x128xf32>
    %12 = vector.extract_strided_slice %10 {offsets = [0, 128], sizes = [16, 128], strides = [1, 1]} : vector<16x256xf32> to vector<16x128xf32>
    %cst_8 = arith.constant 5.000000e-01 : f32
    %13 = vector.broadcast %cst_8 : f32 to vector<16x128xf32>
    %14 = arith.mulf %13, %12 : vector<16x128xf32>
    %cst_9 = arith.constant 2.000000e+00 : f32
    %15 = math.sqrt %cst_9 : f32
    %cst_10 = arith.constant 1.000000e+00 : f32
    %16 = arith.divf %cst_10, %15 : f32
    %17 = vector.broadcast %16 : f32 to vector<16x128xf32>
    %18 = arith.mulf %12, %17 : vector<16x128xf32>
    %19 = math.erf %18 : vector<16x128xf32>
    %cst_11 = arith.constant 1.000000e+00 : f32
    %20 = vector.broadcast %cst_11 : f32 to vector<16x128xf32>
    %21 = arith.addf %20, %19 : vector<16x128xf32>
    %22 = arith.mulf %14, %21 : vector<16x128xf32>
    %23 = arith.mulf %11, %22 : vector<16x128xf32>
    %c0_12 = arith.constant 0 : index
    %c0_13 = arith.constant 0 : index
    %24 = vector.load %arg8[%c0_12, %c0_13] : memref<16x128xf32, #tpu.memory_space<vmem>>, vector<16x128xf32>
    %c0_14 = arith.constant 0 : index
    %c0_15 = arith.constant 0 : index
    %c0_16 = arith.constant 0 : index
    %25 = vector.load %arg5[%c0_14, %c0_15, %c0_16] : memref<1x128x128xf32, #tpu.memory_space<vmem>>, vector<1x128x128xf32>
    %26 = vector.shape_cast %25 : vector<1x128x128xf32> to vector<128x128xf32>
    %cst_17 = arith.constant dense<0.000000e+00> : vector<16x128xf32>
    %27 = tpu.matmul %23, %26, %cst_17 {dimension_numbers = #tpu.dot_dimension_numbers<[1], [0], [0], [1], [0, 0, 1, 1], [], []>} : vector<16x128xf32>, vector<128x128xf32>, vector<16x128xf32> -> vector<16x128xf32>
    %28 = arith.addf %24, %27 : vector<16x128xf32>
    %c0_18 = arith.constant 0 : index
    %c0_19 = arith.constant 0 : index
    %29 = vector.load %arg8[%c0_18, %c0_19] : memref<16x128xf32, #tpu.memory_space<vmem>>, vector<16x128xf32>
    tpu.vector_store %arg8[%c0_18, %c0_19], %28 {strides = array<i32>} : memref<16x128xf32, #tpu.memory_space<vmem>>, vector<16x128xf32>,
    %c0_i32_20 = arith.constant 0 : i32
    %30 = arith.cmpi eq, %arg1, %c0_i32_20 : i32
    %31 = arith.extui %30 : i1 to i32
    %c0_i32_21 = arith.constant 0 : i32
    %32 = arith.cmpi ne, %31, %c0_i32_21 : i32
    scf.if %32 {
      %c0_22 = arith.constant 0 : index
      %c0_23 = arith.constant 0 : index
      %33 = vector.load %arg8[%c0_22, %c0_23] : memref<16x128xf32, #tpu.memory_space<vmem>>, vector<16x128xf32>
      %c0_24 = arith.constant 0 : index
      %c0_25 = arith.constant 0 : index
      %34 = vector.load %arg6[%c0_24, %c0_25] : memref<1x128xf32, #tpu.memory_space<vmem>>, vector<1x128xf32>
      %35 = vector.broadcast %34 : vector<1x128xf32> to vector<16x128xf32>
      %36 = arith.addf %33, %35 : vector<16x128xf32>
      %c0_26 = arith.constant 0 : index
      %c0_27 = arith.constant 0 : index
      %37 = vector.load %arg7[%c0_26, %c0_27] : memref<16x128xf32, #tpu.memory_space<vmem>>, vector<16x128xf32>
      tpu.vector_store %arg7[%c0_26, %c0_27], %36 {strides = array<i32>} : memref<16x128xf32, #tpu.memory_space<vmem>>, vector<16x128xf32>,
    } else {
    }
    return
  }
  func.func @transform_0(%arg0: i32, %arg1: i32) -> (i32, i32) {
    %c0_i32 = arith.constant 0 : i32
    %c0_i32_0 = arith.constant 0 : i32
    return %arg0, %c0_i32 : i32, i32
  }
  func.func @transform_1(%arg0: i32, %arg1: i32) -> (i32, i32, i32) {
    %c0_i32 = arith.constant 0 : i32
    %c0_i32_0 = arith.constant 0 : i32
    %c0_i32_1 = arith.constant 0 : i32
    return %arg1, %c0_i32, %c0_i32_0 : i32, i32, i32
  }
  func.func @transform_2(%arg0: i32, %arg1: i32) -> (i32, i32, i32) {
    %c0_i32 = arith.constant 0 : i32
    %c0_i32_0 = arith.constant 0 : i32
    %c0_i32_1 = arith.constant 0 : i32
    return %arg1, %c0_i32, %c0_i32_0 : i32, i32, i32
  }
  func.func @transform_3(%arg0: i32, %arg1: i32) -> (i32, i32, i32) {
    %c0_i32 = arith.constant 0 : i32
    %c0_i32_0 = arith.constant 0 : i32
    %c0_i32_1 = arith.constant 0 : i32
    return %arg1, %c0_i32, %c0_i32_0 : i32, i32, i32
  }
  func.func @transform_4(%arg0: i32, %arg1: i32) -> (i32, i32) {
    %c0_i32 = arith.constant 0 : i32
    %c0_i32_0 = arith.constant 0 : i32
    %c0_i32_1 = arith.constant 0 : i32
    return %c0_i32, %c0_i32_0 : i32, i32
  }
  func.func @transform_5(%arg0: i32, %arg1: i32) -> (i32, i32) {
    %c0_i32 = arith.constant 0 : i32
    %c0_i32_0 = arith.constant 0 : i32
    return %arg0, %c0_i32 : i32, i32
  }
}

</mosaic_0001>

<bundles_post_ra>
// kernel: tpu_custom_call.1
= control target key start
LH: loop header
LB: loop body
LE: loop exit
PB: predicated region body
PF: predicated region fallthrough
CT: control target
= control target key end

     0   :  { %10 = vsyncpa [#allocation4], 0  ;;  %s622_s0 = inlined_call_operand.hbm [shape: f32[16,32], index: 0, kind: input, shape index: {}]   ;;  %s623_s1 = inlined_call_operand.hbm [shape: f32[1,32,256], index: 1, kind: input, shape index: {}]   ;;  %s624_s2 = inlined_call_operand.vmem [shape: f32[1,1,256], index: 2, kind: input, shape index: {}]   ;;  %s625_s3 = inlined_call_operand.hbm [shape: f32[1,128,128], index: 3, kind: input, shape index: {}]   ;;  %s626_s4 = inlined_call_operand.vmem [shape: f32[1,128], index: 4, kind: input, shape index: {}]   ;;  %s627_s5 = inlined_call_operand.hbm [shape: f32[16,128], index: 5, kind: output, shape index: {}]  }
   0x1   :  { %11 = vsyncpa [#allocation7], 0 }
   0x2   :  { %12 = vsyncpa [#allocation5], 0  ;;  %s520_s18 = smov [#allocation6]   ;;  %s426_s22 = scalar_lea.hbm %s623_s1, 1024 }
   0x3   :  { %s30_s19 = sshll.u32 %s520_s18, 4  ;;  %p427_p0 = scmp.ne.s32.totalorder %s623_s1, %s426_s22  ;;  %s31_s19 = int_to_ptr.vmem [resolvable:$true] %s30_s19 }
   0x4   :  { %p430_p1 = scmp.lt.u32.totalorder %s426_s22, %s623_s1 }
   0x6   :  { %p432_p2 = pnand %p430_p1, %p427_p0 }
   0x8   :  { %435 = shalt.err (!%p432_p2)
}
   0x9   :  { %s436_s27 = scalar_lea.vmem %s31_s19, 1024  ;;  %p441_p4 = scmp.lt.s32.totalorder %s31_s19, %s31_s19 }
   0xa   :  { %p437_p3 = scmp.ne.s32.totalorder %s31_s19, %s436_s27  ;;  %p442_p5 = scmp.lt.s32.totalorder %s436_s27, %s436_s27 }
   0xc   :  { %p443_p6 = por %p442_p5, %p441_p4 }
   0xe   :  { %p444_p7 = pnand %p443_p6, %p437_p3 }
  0x10   :  { %447 = shalt.err (!%p444_p7)
}
  0x11   :  { %s521_s28 = smov 256   ;;  %s522_s29 = smov 16  }
  0x12   :  { %36 = dma.hbm_to_vmem [thread:$0]  %s623_s1, 1024, %s31_s19, [#allocation7], %s521_s28, %s521_s28, %s522_s29  }
  0x13   :  { %s523_s7 = smov [#allocation3]   ;;  %s448_s11 = scalar_lea.hbm %s622_s0, 256 }
  0x14   :  { %s18_s8 = sshll.u32 %s523_s7, 4  ;;  %p449_p8 = scmp.ne.s32.totalorder %s622_s0, %s448_s11  ;;  %s19_s8 = int_to_ptr.vmem [resolvable:$true] %s18_s8 }
  0x15   :  { %p452_p9 = scmp.lt.u32.totalorder %s448_s11, %s622_s0 }
  0x17   :  { %p454_p10 = pnand %p452_p9, %p449_p8 }
  0x19   :  { %457 = shalt.err (!%p454_p10)
}
  0x1a   :  { %s458_s16 = scalar_lea.vmem %s19_s8, 256  ;;  %p463_p12 = scmp.lt.s32.totalorder %s19_s8, %s19_s8 }
  0x1b   :  { %p459_p11 = scmp.ne.s32.totalorder %s19_s8, %s458_s16  ;;  %p464_p13 = scmp.lt.s32.totalorder %s458_s16, %s458_s16 }
  0x1d   :  { %p465_p0 = por %p464_p13, %p463_p12 }
  0x1f   :  { %p466_p1 = pnand %p465_p0, %p459_p11 }
  0x21   :  { %469 = shalt.err (!%p466_p1)
}
  0x22   :  { %s524_s1 = smov 128   ;;  %s525_s17 = smov 8  }
  0x23   :  { %24 = dma.hbm_to_vmem [thread:$0]  %s622_s0, 256, %s19_s8, [#allocation4], %s524_s1, %s524_s1, %s525_s17  }
  0x24   :  { %s526_s20 = smov [#allocation8]   ;;  %s470_s24 = scalar_lea.hbm %s625_s3, 2048 }
  0x25   :  { %s44_s21 = sshll.u32 %s526_s20, 4  ;;  %p471_p2 = scmp.ne.s32.totalorder %s625_s3, %s470_s24  ;;  %s45_s21 = int_to_ptr.vmem [resolvable:$true] %s44_s21 }
  0x26   :  { %p474_p3 = scmp.lt.u32.totalorder %s470_s24, %s625_s3 }
  0x28   :  { %p476_p4 = pnand %p474_p3, %p471_p2 }
  0x2a   :  { %479 = shalt.err (!%p476_p4)
}
  0x2b   :  { %s480_s29 = scalar_lea.vmem %s45_s21, 2048  ;;  %p485_p6 = scmp.lt.s32.totalorder %s45_s21, %s45_s21 }
  0x2c   :  { %p481_p5 = scmp.ne.s32.totalorder %s45_s21, %s480_s29  ;;  %p486_p7 = scmp.lt.s32.totalorder %s480_s29, %s480_s29 }
  0x2e   :  { %p487_p8 = por %p486_p7, %p485_p6 }
  0x30   :  { %p488_p9 = pnand %p487_p8, %p481_p5 }
  0x32   :  { %491 = shalt.err (!%p488_p9)
}
  0x33   :  { %50 = dma.hbm_to_vmem [thread:$0]  %s625_s3, 2048, %s45_s21, [#allocation7], %s524_s1, %s524_s1, %s525_s17  }
  0x34   :  { %514 = dma.done.wait [#allocation4], 256  }
  0x35   :  { %515 = vsyncadd [#allocation4], 4294967040 }
  0x36   :  { %516 = dma.done.wait [#allocation7], 3072  }
  0x37   :  { %517 = vsyncadd [#allocation7], 4294964224  ;;  %v527_v0 = vmov 0.0   ;;  %v71_v1 = vld [vmem:[#allocation6 + $0x8] sm:$0xff]  ;;  %v73_v2 = vld [vmem:[#allocation6 + $0x18] sm:$0xff]  ;;  %vm90_vm0 = vcmask 261120   ;;  %v80_v39 = vlaneseq }
  0x38   :  { %161 = vmatprep.mubr.f32.mxu0 %v527_v0  ;;  %v70_v3 = vld [vmem:[#allocation6] sm:$0xff]  ;;  %v373_v4 = vpack.c.bf16 %v73_v2, %v71_v1  ;;  %v72_v5 = vld [vmem:[#allocation6 + $0x10] sm:$0xff]  ;;  %v75_v6 = vld [vmem:[#allocation6 + $0x28] sm:$0xff]  ;;  %s528_s8 = smov [#allocation9]  }
  0x39   :  { %v77_v7 = vld [vmem:[#allocation6 + $0x38] sm:$0xff]  ;;  %v375_v8 = vpack.c.bf16 %v72_v5, %v70_v3  ;;  %v74_v10 = vld [vmem:[#allocation6 + $0x20] sm:$0xff]  ;;  %v76_v11 = vld [vmem:[#allocation6 + $0x30] sm:$0xff]  ;;  %v81_v40 = vshrl.u32 %v80_v39, 7  ;;  %s304_s9 = sshll.u32 %s528_s8, 4  ;;  %s305_s9 = int_to_ptr.vmem [resolvable:$true] %s304_s9 }
  0x3a   :  { %v377_v9 = vpack.c.bf16 %v77_v7, %v75_v6  ;;  %374 = vmatprep.subr.bf16.mxu0 %v373_v4  ;;  %v188_v12 = vld [vmem:[#allocation8] sm:$0xff]  ;;  %v189_v13 = vld [vmem:[#allocation8 + $0x8] sm:$0xff]  ;;  %v379_v14 = vpack.c.bf16 %v76_v11, %v74_v10  ;;  %v190_v16 = vld [vmem:[#allocation8 + $0x10] sm:$0xff]  ;;  %s492_s10 = scalar_lea.vmem %s305_s9, 256  ;;  %p497_p11 = scmp.lt.s32.totalorder %s305_s9, %s305_s9 }
  0x3b   :  { %376 = vmatpush1.bf16.msra.mxu0 %v375_v8  ;;  %v381_v15 = vpack.c.bf16 %v189_v13, %v188_v12  ;;  %v191_v17 = vld [vmem:[#allocation8 + $0x18] sm:$0xff]  ;;  %v68_v19 = vld [vmem:[#allocation3] sm:$0xff]  ;;  %v192_v21 = vld [vmem:[#allocation8 + $0x20] sm:$0xff]  ;;  %v86_v41 = vsub.s32 1, %v81_v40  ;;  %v82_v52 = vsub.s32 0, %v81_v40  ;;  %p493_p10 = scmp.ne.s32.totalorder %s305_s9, %s492_s10  ;;  %p498_p12 = scmp.lt.s32.totalorder %s492_s10, %s492_s10 }
  0x3c   :  { %378 = vmatprep.subr.bf16.mxu0 %v377_v9  ;;  %v385_v18 = vpack.c.bf16 %v191_v17, %v190_v16  ;;  %v69_v20 = vld [vmem:[#allocation3 + $0x8] sm:$0xff]  ;;  %v193_v22 = vld [vmem:[#allocation8 + $0x28] sm:$0xff]  ;;  %v194_v24 = vld [vmem:[#allocation8 + $0x30] sm:$0xff] }
  0x3d   :  { %382 = vmatprep.subr.bf16.mxu1 %v381_v15  ;;  %v389_v23 = vpack.c.bf16 %v193_v22, %v192_v21  ;;  %v195_v25 = vld [vmem:[#allocation8 + $0x38] sm:$0xff]  ;;  %v196_v27 = vld [vmem:[#allocation8 + $0x40] sm:$0xff]  ;;  %v197_v28 = vld [vmem:[#allocation8 + $0x48] sm:$0xff]  ;;  %p499_p13 = por %p498_p12, %p497_p11 }
  0x3e   :  { %384 = vmatpush3.bf16.msra.mxu1 %v381_v15  ;;  %v393_v26 = vpack.c.bf16 %v195_v25, %v194_v24  ;;  %v397_v29 = vpack.c.bf16 %v197_v28, %v196_v27  ;;  %v198_v30 = vld [vmem:[#allocation8 + $0x50] sm:$0xff]  ;;  %v199_v31 = vld [vmem:[#allocation8 + $0x58] sm:$0xff]  ;;  %v200_v33 = vld [vmem:[#allocation8 + $0x60] sm:$0xff] }
  0x3f   :  { %380 = vmatpush1.bf16.msra.mxu0 %v379_v14  ;;  %386 = vmatprep.subr.bf16.mxu1 %v385_v18  ;;  %v401_v32 = vpack.c.bf16 %v199_v31, %v198_v30  ;;  %v201_v34 = vld [vmem:[#allocation8 + $0x68] sm:$0xff]  ;;  %v202_v36 = vld [vmem:[#allocation8 + $0x70] sm:$0xff]  ;;  %v203_v37 = vld [vmem:[#allocation8 + $0x78] sm:$0xff]  ;;  %p500_p0 = pnand %p499_p13, %p493_p10 }
  0x40   :  { %v405_v35 = vpack.c.bf16 %v201_v34, %v200_v33  ;;  %v409_v38 = vpack.c.bf16 %v203_v37, %v202_v36  ;;  %v78_v42 = vld [vmem:[%s624_s2] sm:$0x3] }
  0x41   :  { %v87_v43 = vrot.slane %v78_v42, %v86_v41  ;;  %v83_v53 = vrot.slane %v78_v42, %v82_v52  ;;  %v319_v2 = vld [vmem:[%s626_s4] ss:$0 sm:$0xff] }
  0x42   :  { %317 = vmatmul.mubr.msk.f32.vlgmr.msra.gmra.mrb[0].mxu0 %vm90_vm0, %v68_v19  ;;  %388 = vmatpush3.bf16.msra.mxu1 %v385_v18 }
  0x43   :  { %167 = vmatprep.mubr.f32.mxu0 %v527_v0  ;;  %390 = vmatprep.subr.bf16.mxu1 %v389_v23 }
  0x46   :  { %318 = vmatmul.mubr.msk.f32.gmra.mrb[2].mxu0 %vm90_vm0, %v69_v20  ;;  %392 = vmatpush3.bf16.msra.mxu1 %v389_v23 }
  0x47   :  { %394 = vmatprep.subr.bf16.mxu1 %v393_v26 }
  0x4a   :  { %396 = vmatpush3.bf16.msra.mxu1 %v393_v26 }
  0x4b   :  { %398 = vmatprep.subr.bf16.mxu1 %v397_v29 }
  0x4e   :  { %400 = vmatpush3.bf16.msra.mxu1 %v397_v29 }
  0x4f   :  { %402 = vmatprep.subr.bf16.mxu1 %v401_v32 }
  0x52   :  { %404 = vmatpush3.bf16.msra.mxu1 %v401_v32 }
  0x53   :  { %406 = vmatprep.subr.bf16.mxu1 %v405_v35 }
  0x56   :  { %408 = vmatpush3.bf16.msra.mxu1 %v405_v35 }
  0x57   :  { %410 = vmatprep.subr.bf16.mxu1 %v409_v38 }
  0x5a   :  { %412 = vmatpush3.bf16.msra.mxu1 %v409_v38 }
 0x115   :  { %v163_v44 = vpop.f32.mrb[0].mxu0 }
 0x116   :  { %v165_v45 = vpop.f32.mrb[1].mxu0  ;;  %v164_v57 = vadd.f32 %v163_v44, %v83_v53 }
 0x117   :  { %v166_v46 = vadd.f32 %v165_v45, %v87_v43 }
 0x119   :  { %v176_v47 = vmul.f32 0.70710677, %v166_v46  ;;  %v169_v48 = vpop.f32.mrb[2].mxu0  ;;  %v174_v55 = vmul.f32 0.5, %v166_v46 }
 0x11a   :  { %v171_v49 = vpop.f32.mrb[3].mxu0  ;;  %v170_v63 = vadd.f32 %v169_v48, %v83_v53 }
 0x11b   :  { %422 = verf.f32 %v176_v47  ;;  %v172_v50 = vadd.f32 %v171_v49, %v87_v43 }
 0x11d   :  { %v177_v51 = vmul.f32 0.70710677, %v172_v50  ;;  %v175_v60 = vmul.f32 0.5, %v172_v50 }
 0x11f   :  { %424 = verf.f32 %v177_v51 }
 0x125   :  { %v423_v54 = vpop.eup %422 }
 0x126   :  { %v180_v56 = vadd.f32 1.0, %v423_v54 }
 0x128   :  { %v182_v58 = vmul.f32 %v180_v56, %v174_v55 }
 0x129   :  { %v425_v59 = vpop.eup %424 }
 0x12a   :  { %v181_v61 = vadd.f32 1.0, %v425_v59  ;;  %v184_v62 = vmul.f32 %v182_v58, %v164_v57 }
 0x12c   :  { %v183_v0 = vmul.f32 %v181_v61, %v175_v60  ;;  %370 = vmatprep.mubr.f32.mxu1 %v184_v62 }
 0x12e   :  { %v185_v1 = vmul.f32 %v183_v0, %v170_v63 }
 0x130   :  { %371 = vmatmul.mubr.f32.vlgmr.msra.gmra.mrb[0].mxu1 %v185_v1 }
 0x203   :  { %v372_v3 = vpop.f32.mrb[0].mxu1 }
 0x204   :  { %v296_v4 = vadd.f32 %v372_v3, %v319_v2  ;;  %v270_v5 = vpop.f32.mrb[1].mxu1 }
 0x205   :  { %v295_v6 = vadd.f32 %v319_v2, %v270_v5 }
 0x206   :  { %298 = vst [vmem:[#allocation9 + $0x8] sm:$0xff] %v296_v4 }
 0x207   :  { %297 = vst [vmem:[#allocation9] sm:$0xff] %v295_v6 }
 0x208   :  { %503 = shalt.err (!%p500_p0)
}
 0x209   :  { %s504_s4 = scalar_lea.hbm %s627_s5, 256 }
 0x20a   :  { %p505_p1 = scmp.ne.s32.totalorder %s627_s5, %s504_s4  ;;  %p508_p2 = scmp.lt.u32.totalorder %s504_s4, %s627_s5 }
 0x20c   :  { %p510_p3 = pnand %p508_p2, %p505_p1 }
 0x20e   :  { %513 = shalt.err (!%p510_p3)
}
 0x20f   :  { %310 = dma.vmem_to_hbm [thread:$0]  %s305_s9, 256, %s627_s5, [#allocation5], %s524_s1, %s524_s1, %s525_s17  }
 0x210   :  { %518 = dma.done.wait [#allocation5], 256  }
 0x211   :  { %519 = vsyncadd [#allocation5], 4294967040 }
 0x212   :  { %314 = vsyncpa [#allocation4], 1 }
 0x213   :  { %315 = vsyncpa [#allocation7], 1 }
 0x214   :  { %316 = vsyncpa [#allocation5], 1 }

</bundles_post_ra>
